<compile_context>
chip_gen: v5e
topology: v5e:2x2
jax: 0.10.0
libtpu: 0.0.40
codegen_flags: <defaults>
</compile_context>

<pallas_src>
import functools
import math

import jax
import jax.numpy as jnp
from jax.experimental import pallas as pl
from jax.experimental.pallas import tpu as pltpu


def _round_up(x, m):
    return (x + m - 1) // m * m


def _folded_conv_kernel(x_ref, w_ref, b_ref, o_ref, *, taps, tile_rows):
    """One (batch, row-tile) grid step.

    x_ref: (1, fold_rows, C_eff)     full (small) folded input slab for this batch
    w_ref: (taps, C_eff, P*C_out)    folded polyphase weights (resident)
    b_ref: (1, P*C_out)              folded bias (resident)
    o_ref: (1, tile_rows, P*C_out)   one output row-tile
    """
    r0 = pl.multiple_of(pl.program_id(1) * tile_rows, tile_rows)
    acc = jnp.dot(x_ref[0, pl.ds(r0, tile_rows), :], w_ref[0],
                  preferred_element_type=jnp.float32)
    for d in range(1, taps):
        acc = acc + jnp.dot(x_ref[0, pl.ds(r0 + d, tile_rows), :], w_ref[d],
                            preferred_element_type=jnp.float32)
    o_ref[0, :, :] = (acc + b_ref[...]).astype(o_ref.dtype)


@functools.partial(jax.jit, static_argnames=("kernel_size", "stride", "upsample"))
def transpose1d_layer_forward(x_ncl, weight, bias, *, kernel_size, stride, upsample):
    """x_ncl: (N, C_in, L); weight: (C_out, C_in, K) [PyTorch layout]; bias: (C_out,)."""
    n, c_in, l = x_ncl.shape
    c_out = weight.shape[0]
    pad = kernel_size // 2

    l_up = l * upsample
    l_out = (l_up + 2 * pad - kernel_size) // stride + 1
    assert l_out >= 1

    # ---- polyphase structure (all static, trace-time ints) ----
    g = math.gcd(stride, upsample)
    p = upsample // g          # outputs produced per "row"
    sr = stride // g           # original-input rows consumed per output row
    c_eff = sr * c_in

    # tap offsets d(r, k) = floor((r*stride + k - pad)/up) into the ORIGINAL x
    offs = [(r * stride + kk - pad) // upsample
            for r in range(p) for kk in range(kernel_size)]
    d_min, d_max = min(offs), max(offs)
    q_min, q_max = d_min // sr, d_max // sr
    taps = q_max - q_min + 1

    # ---- output row tiling ----
    rows = -(-l_out // p)                       # ceil(l_out / p)
    if rows <= 512:
        tile_rows = _round_up(rows, 8)
        rows_padded = tile_rows
    else:
        tile_rows = 512
        rows_padded = _round_up(rows, tile_rows)

    # ---- fold weights: Wf[q, rr*C_in+ci, r*C_out+co] = sum_{matching k} W[co,ci,k] ----
    w_kio = jnp.transpose(weight, (2, 1, 0)).astype(jnp.float32)    # (K, C_in, C_out)
    wf = jnp.zeros((taps, sr, c_in, p, c_out), jnp.float32)
    for r in range(p):
        for kk in range(kernel_size):
            d = (r * stride + kk - pad) // upsample
            wf = wf.at[d // sr - q_min, d % sr, :, r, :].add(w_kio[kk])
    w_folded = wf.reshape(taps, c_eff, p * c_out)
    b_folded = jnp.tile(bias.astype(jnp.float32), p).reshape(1, p * c_out)

    # ---- prepare the (small, original-size) input slab: NCL -> NLC, halo pad, fold ----
    left = -q_min * sr
    fold_rows = max(rows_padded + taps - 1, -(-(left + l) // sr))
    right = sr * fold_rows - left - l
    x_nlc = jnp.transpose(x_ncl, (0, 2, 1))                         # (N, L, C_in)
    x_halo = jnp.pad(x_nlc, ((0, 0), (left, right), (0, 0)))
    x_fold = x_halo.reshape(n, fold_rows, c_eff)

    # ---- VMEM budget (double-buffered blocks), capped for v7x's 64 MiB physical ----
    est = 4 * (2 * fold_rows * c_eff + 2 * tile_rows * p * c_out
               + taps * c_eff * p * c_out + p * c_out)
    vmem_limit = int(min(max(4 * est, 32 * 1024 * 1024), 48 * 1024 * 1024))
    # TODO(synk): for very long inputs (fold_rows*c_eff*4B >~ 16 MiB) switch x to
    # halo-windowed row tiles instead of keeping the whole per-batch slab resident.

    kernel = functools.partial(_folded_conv_kernel, taps=taps, tile_rows=tile_rows)

    out_k = pl.pallas_call(
        kernel,
        out_shape=jax.ShapeDtypeStruct((n, rows_padded, p * c_out), x_ncl.dtype),
        grid_spec=pltpu.PrefetchScalarGridSpec(
            num_scalar_prefetch=0,
            grid=(n, rows_padded // tile_rows),
            in_specs=[
                pl.BlockSpec((1, fold_rows, c_eff), lambda b, t: (b, 0, 0)),
                pl.BlockSpec((taps, c_eff, p * c_out), lambda b, t: (0, 0, 0)),
                pl.BlockSpec((1, p * c_out), lambda b, t: (0, 0)),
            ],
            out_specs=pl.BlockSpec((1, tile_rows, p * c_out), lambda b, t: (b, t, 0)),
        ),
        compiler_params=pltpu.CompilerParams(
            dimension_semantics=("parallel", "parallel"),
            vmem_limit_bytes=vmem_limit,
        ),
    )(x_fold, w_folded, b_folded)

    # (N, rows_padded, P*C_out) -> (N, C_out, L_out)
    out = out_k.reshape(n, rows_padded, p, c_out)
    out = jnp.transpose(out, (0, 3, 1, 2)).reshape(n, c_out, rows_padded * p)
    return out[:, :, :l_out]


def _reference(x_ncl, weight, bias, *, kernel_size, stride, upsample):
    """Pure-JAX reference mirroring the PyTorch forward (for correctness check)."""
    pad = kernel_size // 2
    x_up = jnp.repeat(x_ncl, upsample, axis=2)
    x_up = jnp.pad(x_up, ((0, 0), (0, 0), (pad, pad)))
    out = jax.lax.conv_general_dilated(
        x_up, weight, window_strides=(stride,), padding="VALID",
        dimension_numbers=("NCH", "OIH", "NCH"),
    )
    return out + bias.reshape(1, -1, 1)


if __name__ == "__main__":
    # Module hyper-params (deterministic, in-script).
    in_channels, out_channels = 4, 8
    kernel_size, stride, upsample = 5, 1, 4
    batch, length = 2, 16

    key = jax.random.PRNGKey(0)
    kx, kw, kb = jax.random.split(key, 3)

    x = jax.random.normal(kx, (batch, in_channels, length), dtype=jnp.float32)

    # PyTorch Conv1d default init: U(-1/sqrt(C_in*K), 1/sqrt(C_in*K)) for weight & bias.
    bound = 1.0 / (in_channels * kernel_size) ** 0.5
    weight = jax.random.uniform(
        kw, (out_channels, in_channels, kernel_size), jnp.float32, -bound, bound
    )
    bias = jax.random.uniform(kb, (out_channels,), jnp.float32, -bound, bound)

    out = transpose1d_layer_forward(
        x, weight, bias,
        kernel_size=kernel_size, stride=stride, upsample=upsample,
    )
    out = jax.block_until_ready(out)

    ref = _reference(
        x, weight, bias,
        kernel_size=kernel_size, stride=stride, upsample=upsample,
    )
    assert out.shape == ref.shape, (out.shape, ref.shape)
    assert jnp.allclose(out, ref, atol=1e-5, rtol=1e-5)

    print("KERNEL_OK")
</pallas_src>

<mosaic_0001>
module attributes {stable_mosaic.version = 11 : i64} {
  func.func @_folded_conv_kernel(%arg0: i32, %arg1: i32, %arg2: memref<1x18x4xf32, #tpu.memory_space<vmem>>, %arg3: memref<3x4x32xf32, #tpu.memory_space<vmem>>, %arg4: memref<1x32xf32, #tpu.memory_space<vmem>>, %arg5: memref<1x16x32xf32, #tpu.memory_space<vmem>>) attributes {dimension_semantics = [#tpu.dimension_semantics<parallel>, #tpu.dimension_semantics<parallel>], iteration_bounds = array<i64: 2, 1>, scalar_prefetch = 0 : i64, scratch_operands = 0 : i64, tpu.core_type = #tpu.core_type<tc>, window_params = [{transform_indices = @transform_0, window_bounds = array<i64: 1, 18, 4>}, {pipeline_mode = #tpu.pipeline_mode<synchronous>, transform_indices = @transform_1, window_bounds = array<i64: 3, 4, 32>}, {pipeline_mode = #tpu.pipeline_mode<synchronous>, transform_indices = @transform_2, window_bounds = array<i64: 1, 32>}, {transform_indices = @transform_3, window_bounds = array<i64: 1, 16, 32>}]} {
    %c16_i32 = arith.constant 16 : i32
    %0 = arith.muli %arg1, %c16_i32 : i32
    %1 = tpu.assume_multiple %0, 16 : i32
    %c0 = arith.constant 0 : index
    %2 = arith.index_cast %1 : i32 to index
    %c0_0 = arith.constant 0 : index
    %3 = vector.load %arg2[%c0, %2, %c0_0] : memref<1x18x4xf32, #tpu.memory_space<vmem>>, vector<1x16x4xf32>
    %4 = vector.shape_cast %3 : vector<1x16x4xf32> to vector<16x4xf32>
    %c0_1 = arith.constant 0 : index
    %c0_2 = arith.constant 0 : index
    %c0_3 = arith.constant 0 : index
    %5 = vector.load %arg3[%c0_1, %c0_2, %c0_3] : memref<3x4x32xf32, #tpu.memory_space<vmem>>, vector<1x4x32xf32>
    %6 = vector.shape_cast %5 : vector<1x4x32xf32> to vector<4x32xf32>
    %cst = arith.constant dense<0.000000e+00> : vector<16x32xf32>
    %7 = tpu.matmul %4, %6, %cst {dimension_numbers = #tpu.dot_dimension_numbers<[1], [0], [0], [1], [0, 0, 1, 1], [], []>} : vector<16x4xf32>, vector<4x32xf32>, vector<16x32xf32> -> vector<16x32xf32>
    %c1_i32 = arith.constant 1 : i32
    %8 = arith.addi %1, %c1_i32 : i32
    %c0_4 = arith.constant 0 : index
    %9 = arith.index_cast %8 : i32 to index
    %c0_5 = arith.constant 0 : index
    %10 = vector.load %arg2[%c0_4, %9, %c0_5] : memref<1x18x4xf32, #tpu.memory_space<vmem>>, vector<1x16x4xf32>
    %11 = vector.shape_cast %10 : vector<1x16x4xf32> to vector<16x4xf32>
    %c1 = arith.constant 1 : index
    %c0_6 = arith.constant 0 : index
    %c0_7 = arith.constant 0 : index
    %12 = vector.load %arg3[%c1, %c0_6, %c0_7] : memref<3x4x32xf32, #tpu.memory_space<vmem>>, vector<1x4x32xf32>
    %13 = vector.shape_cast %12 : vector<1x4x32xf32> to vector<4x32xf32>
    %cst_8 = arith.constant dense<0.000000e+00> : vector<16x32xf32>
    %14 = tpu.matmul %11, %13, %cst_8 {dimension_numbers = #tpu.dot_dimension_numbers<[1], [0], [0], [1], [0, 0, 1, 1], [], []>} : vector<16x4xf32>, vector<4x32xf32>, vector<16x32xf32> -> vector<16x32xf32>
    %15 = arith.addf %7, %14 : vector<16x32xf32>
    %c2_i32 = arith.constant 2 : i32
    %16 = arith.addi %1, %c2_i32 : i32
    %c0_9 = arith.constant 0 : index
    %17 = arith.index_cast %16 : i32 to index
    %c0_10 = arith.constant 0 : index
    %18 = vector.load %arg2[%c0_9, %17, %c0_10] : memref<1x18x4xf32, #tpu.memory_space<vmem>>, vector<1x16x4xf32>
    %19 = vector.shape_cast %18 : vector<1x16x4xf32> to vector<16x4xf32>
    %c2 = arith.constant 2 : index
    %c0_11 = arith.constant 0 : index
    %c0_12 = arith.constant 0 : index
    %20 = vector.load %arg3[%c2, %c0_11, %c0_12] : memref<3x4x32xf32, #tpu.memory_space<vmem>>, vector<1x4x32xf32>
    %21 = vector.shape_cast %20 : vector<1x4x32xf32> to vector<4x32xf32>
    %cst_13 = arith.constant dense<0.000000e+00> : vector<16x32xf32>
    %22 = tpu.matmul %19, %21, %cst_13 {dimension_numbers = #tpu.dot_dimension_numbers<[1], [0], [0], [1], [0, 0, 1, 1], [], []>} : vector<16x4xf32>, vector<4x32xf32>, vector<16x32xf32> -> vector<16x32xf32>
    %23 = arith.addf %15, %22 : vector<16x32xf32>
    %c0_14 = arith.constant 0 : index
    %c0_15 = arith.constant 0 : index
    %24 = vector.load %arg4[%c0_14, %c0_15] : memref<1x32xf32, #tpu.memory_space<vmem>>, vector<1x32xf32>
    %25 = vector.broadcast %24 : vector<1x32xf32> to vector<16x32xf32>
    %26 = arith.addf %23, %25 : vector<16x32xf32>
    %c0_16 = arith.constant 0 : index
    %c0_17 = arith.constant 0 : index
    %c0_18 = arith.constant 0 : index
    %27 = vector.load %arg5[%c0_16, %c0_17, %c0_18] : memref<1x16x32xf32, #tpu.memory_space<vmem>>, vector<1x16x32xf32>
    %28 = vector.shape_cast %27 : vector<1x16x32xf32> to vector<16x32xf32>
    %29 = vector.shape_cast %26 : vector<16x32xf32> to vector<1x16x32xf32>
    tpu.vector_store %arg5[%c0_16, %c0_17, %c0_18], %29 {strides = array<i32>} : memref<1x16x32xf32, #tpu.memory_space<vmem>>, vector<1x16x32xf32>,
    return
  }
  func.func @transform_0(%arg0: i32, %arg1: i32) -> (i32, i32, i32) {
    %c0_i32 = arith.constant 0 : i32
    %c0_i32_0 = arith.constant 0 : i32
    %c0_i32_1 = arith.constant 0 : i32
    return %arg0, %c0_i32, %c0_i32_0 : i32, i32, i32
  }
  func.func @transform_1(%arg0: i32, %arg1: i32) -> (i32, i32, i32) {
    %c0_i32 = arith.constant 0 : i32
    %c0_i32_0 = arith.constant 0 : i32
    %c0_i32_1 = arith.constant 0 : i32
    %c0_i32_2 = arith.constant 0 : i32
    return %c0_i32, %c0_i32_0, %c0_i32_1 : i32, i32, i32
  }
  func.func @transform_2(%arg0: i32, %arg1: i32) -> (i32, i32) {
    %c0_i32 = arith.constant 0 : i32
    %c0_i32_0 = arith.constant 0 : i32
    %c0_i32_1 = arith.constant 0 : i32
    return %c0_i32, %c0_i32_0 : i32, i32
  }
  func.func @transform_3(%arg0: i32, %arg1: i32) -> (i32, i32, i32) {
    %c0_i32 = arith.constant 0 : i32
    %c0_i32_0 = arith.constant 0 : i32
    return %arg0, %arg1, %c0_i32 : i32, i32, i32
  }
}

</mosaic_0001>

<bundles_post_ra>
// kernel: tile.9
= control target key start
LH: loop header
LB: loop body
LE: loop exit
PB: predicated region body
PF: predicated region fallthrough
CT: control target
= control target key end

     0   :  { %s37_s8 = smov 8   ;;  %s38_s9 = smov 16   ;;  %vm7_vm0 = vcmask 64512   ;;  %vm13_vm1 = vcmask 261312   ;;  %vm19_vm2 = vcmask 195712   ;;  %vm25_vm3 = vcmask 130112   ;;  %s55_s0 = inlined_call_operand.vmem [shape: f32[4,8], index: 0, kind: input, shape index: {}]   ;;  %s56_s1 = inlined_call_operand.vmem [shape: f32[1,32], index: 1, kind: output, shape index: {}]  }
   0x1   :  { %v4_v0 = vld [vmem:[%s55_s0] sm:$0xf]  ;;  %s36_s0 = smov 24  }
   0x2   :  { %5 = vst [vmem:[#allocation1] sm:$0xf] %v4_v0 }
   0x9   :  { %v10_v1 = vld [vmem:[#allocation1 + $0x3] sm:$0x1]   ;;  %v22_v2 = vld [vmem:[#allocation1 + $0x1] sm:$0x1]   ;;  %v16_v3 = vld [vmem:[#allocation1 + $0x2] sm:$0x1]  }
   0xa   :  { %11 = vrot.lane.b32.xlu0 %v10_v1, %s36_s0  ;;  %23 = vrot.lane.b32.xlu1 %v22_v2, %s37_s8  ;;  %v6_v4 = vld [vmem:[#allocation1] sm:$0x1]  }
   0xb   :  { %8 = vst.msk [vmem:[#allocation0] sm:$0x1] %vm7_vm0, %v6_v4  }
  0x12   :  { %17 = vrot.lane.b32.xlu0 %v16_v3, %s38_s9 }
  0x7c   :  { %v12_v5 = vpop.permute.xlu0 %11   ;;  %v24_v6 = vpop.permute.xlu1 %23  }
  0x7d   :  { %14 = vst.msk [vmem:[#allocation0] sm:$0x1] %vm13_vm1, %v12_v5  }
  0x84   :  { %v18_v7 = vpop.permute.xlu0 %17  }
  0x85   :  { %20 = vst.msk [vmem:[#allocation0] sm:$0x1] %vm19_vm2, %v18_v7  }
  0x86   :  { %26 = vst.msk [vmem:[#allocation0] sm:$0x1] %vm25_vm3, %v24_v6  }
  0x8d   :  { %v29_v8 = vld [vmem:[#allocation0] sm:$0x1] }
  0x8e   :  { %32 = vst [vmem:[%s56_s1] sm:$0x1] %v29_v8 }

// kernel: tile.8
= control target key start
LH: loop header
LB: loop body
LE: loop exit
PB: predicated region body
PF: predicated region fallthrough
CT: control target
= control target key end

     0   :  { %s22_s0 = inlined_call_operand.vmem [shape: f32[8], index: 0, kind: input, shape index: {}]   ;;  %s23_s1 = inlined_call_operand.vmem [shape: f32[4,8], index: 1, kind: output, shape index: {}]  }
   0x1   :  { %v4_v0 = vld [vmem:[%s22_s0] ss:$0 sm:$0xff] }
   0x2   :  { %5 = vst [vmem:[%s23_s1] sm:$0xf] %v4_v0 }

// kernel: transpose1d_layer_forward.1
= control target key start
LH: loop header
LB: loop body
LE: loop exit
PB: predicated region body
PF: predicated region fallthrough
CT: control target
= control target key end

     0   :  { %s506_s12 = smov 0   ;;  %s508_s13 = smov 0   ;;  %s551_s0 = inlined_call_operand.vmem [shape: f32[2,18,4], index: 0, kind: input, shape index: {}]   ;;  %s552_s1 = inlined_call_operand.vmem [shape: f32[3,4,32], index: 1, kind: input, shape index: {}]   ;;  %s553_s2 = inlined_call_operand.vmem [shape: f32[1,32], index: 2, kind: input, shape index: {}]   ;;  %s554_s3 = inlined_call_operand.vmem [shape: f32[2,16,32], index: 3, kind: output, shape index: {}]  }
   0x1   :  { %s510_s14 = smov 0  }
   0x2 LB: > { %s25_s15 = sadd.s32 1, %s480_s13  ;;  %p413_p0 = scmp.ge.s32.totalorder %s484_s14, 1  ;;  %s484_s14 = sphi %s510_s14, %s13_s14   ;;  %s480_s13 = sphi %s508_s13, %s556_s13   ;;  %s476_s12 = sphi %s506_s12, %s555_s12  }
   0x3   : > { %p27_p1 = scmp.ge.s32.totalorder %s25_s15, 2  ;;  %p151_p2 = scmp.lt.s32.totalorder %s484_s14, 3 }
   0x5   : > { %s558_s15 = smov (%p27_p1, %s25_s15), 0  ;;  %p152_p3 = pnand %p413_p0, %p151_p2 }
   0x6   : > { %p179_p4 = scmp.lt.s32.totalorder (!%p152_p3), %s476_s12, 1 }
   0x7   : > { %155 = sbr.rel (%p152_p3) target bundleno = 162 (0xa2), region = 32 }
   0xc   : > { %vm212_vm0 = vcmask 1043456   ;;  %v428_v0 = vld [vmem:[%s552_s1 + $0x8] sm:$0xf]  ;;  %v419_v1 = vld [vmem:[%s552_s1 + $0x4] sm:$0xf]  ;;  %s560_s12 = smov (!%p179_p4, %s476_s12), 1 }
   0xd   : > { %429 = vmatpush.msk.msra.mxu2 %vm212_vm0, %v428_v0  ;;  %v198_v2 = vld [vmem:[%s552_s1] sm:$0xf]  ;;  %420 = vmatpush.msk.msra.mxu0 %vm212_vm0, %v419_v1  ;;  %s436_s22 = smul.u32 24, %s560_s12  ;;  %vm205_vm1 = vcmask 31744   ;;  %s434_s26 = sshll.u32 %s560_s12, 4  ;;  %vm317_vm2 = vcmask 261120  }
   0xe   : > { %423 = vmatpush.msk.msra.mxu1 %vm212_vm0, %v198_v2  ;;  %435 = vmatpush.msk.msra.mxu3 %vm212_vm0, %v419_v1  ;;  %v461_v12 = vld [vmem:[%s553_s2] ss:$0 sm:$0xff]  ;;  %s192_s4 = scalar_lea.vmem %s554_s3, %s434_s26 }
   0xf   : > { %s183_s25 = scalar_lea.vmem %s551_s0, %s436_s22 }
  0x10   : > { %v426_v3 = vld [vmem:[%s183_s25 + $0x2] sm:$0xff]  ;;  %v427_v7 = vld [vmem:[%s183_s25 + $0xa] sm:$0xff] }
  0x11   : > { %v417_v4 = vld [vmem:[%s183_s25 + $0x1] sm:$0xff]  ;;  %430 = vmatmul.msk.f32.vlgmr.msra.gmra.mxu2 %vm205_vm1, %v426_v3  ;;  %v418_v6 = vld [vmem:[%s183_s25 + $0x9] sm:$0xff] }
  0x12   : > { %v196_v5 = vld [vmem:[%s183_s25] sm:$0xff]  ;;  %421 = vmatmul.msk.f32.vlgmr.msra.gmra.mxu0 %vm205_vm1, %v417_v4  ;;  %422 = vmatmul.msk.f32.vlgmr.msra.gmra.mxu3 %vm205_vm1, %v418_v6  ;;  %v197_v8 = vld [vmem:[%s183_s25 + $0x8] sm:$0xff] }
  0x13   : > { %424 = vmatmul.msk.f32.vlgmr.msra.gmra.mxu1 %vm205_vm1, %v196_v5 }
  0x19   : > { %431 = vmatmul.msk.f32.gmra.mxu2 %vm205_vm1, %v427_v7 }
  0x1b   : > { %425 = vmatmul.msk.f32.gmra.mxu1 %vm205_vm1, %v197_v8 }
  0x8f   : > { %v233_v9 = vpop.f32.mrf.mxu0 }
  0x90   : > { %v265_v10 = vpop.f32.mrf.mxu1 }
  0x91   : > { %v266_v11 = vadd.f32 %v265_v10, %v233_v9 }
  0x94   : > { %v303_v13 = vpop.f32.mrf.mxu2 }
  0x95   : > { %v309_v14 = vadd.f32 %v303_v13, %v266_v11  ;;  %v236_v15 = vpop.f32.mrf.mxu3 }
  0x97   : > { %v315_v16 = vadd.f32 %v461_v12, %v309_v14 }
  0x98   : > { %v268_v17 = vpop.f32.mrf.mxu1 }
  0x99   : > { %318 = vst.msk [vmem:[%s192_s4] sm:$0xff] %vm317_vm2, %v315_v16  ;;  %v269_v18 = vadd.f32 %v268_v17, %v236_v15 }
  0x9c   : > { %v306_v19 = vpop.f32.mrf.mxu2 }
  0x9d   : > { %v310_v20 = vadd.f32 %v306_v19, %v269_v18 }
  0x9f   : > { %v316_v21 = vadd.f32 %v461_v12, %v310_v20 }
  0xa1   : > { %319 = vst.msk [vmem:[%s192_s4 + $0x8] sm:$0xff] %vm317_vm2, %v316_v21 }
  0xa2 PF: > { %s13_s14 = sadd.s32 1, %s484_s14   ;;  %s555_s12 = smov %s480_s13 }
  0xa3   : > { %p10_p5 = scmp.ge.s32.totalorder %s13_s14, 4   ;;  %s556_s13 = smov %s558_s15 }
  0xa5   :  { %12 = sbr.rel (!%p10_p5) target bundleno = 2 (0x2), region = 67 }

</bundles_post_ra>
